<compile_context>
chip_gen: v7x
topology: tpu7x:2x2x1
jax: 0.10.0
libtpu: 0.0.40
codegen_flags: <defaults>
</compile_context>

<pallas_src>
import jax
import jax.numpy as jnp
from jax.experimental import pallas as pl
from jax.experimental.pallas import tpu as pltpu

LANE = 128
_VMEM_LIMIT = 32 * 1024 * 1024  # safe on v5e/v6e (128 MiB phys) and v7x (64 MiB phys)


def _round_up(v, m):
    return ((v + m - 1) // m) * m


# --------------- kernel 1: GraphConv  H = ReLU([X | A@X] @ Wcat + b) ----------
def _gnn_kernel(adj_ref, x_src_ref, x_self_ref, w_cat_ref, b_ref,
                h_ref, acc_ref):
    k = pl.program_id(1)

    @pl.when(k == 0)
    def _():
        acc_ref[...] = jnp.zeros_like(acc_ref)

    # Neighbor aggregation (A @ X): bf16 operands, f32 accumulation on the MXU.
    acc_ref[...] += jnp.dot(adj_ref[...], x_src_ref[...],
                            preferred_element_type=jnp.float32)

    @pl.when(k == pl.num_programs(1) - 1)
    def _():
        # Fused projection: [X | agg] @ [W_self ; W_neigh]  (single MXU push).
        xa = jnp.concatenate(
            [x_self_ref[...], acc_ref[...].astype(jnp.bfloat16)], axis=-1)
        h = jnp.dot(xa, w_cat_ref[...], preferred_element_type=jnp.float32)
        h = jnp.maximum(h + b_ref[...], 0.0)        # bias + ReLU in f32 (VPU)
        h_ref[...] = h.astype(h_ref.dtype)


# --------------- kernel 2: mean pool + MLP head -------------------------------
def _pool_mlp_kernel(pool_ref, inv_cnt_ref, h_ref, w1_ref, b1_ref,
                     w2_ref, b2_ref, out_ref, g_acc_ref):
    k = pl.program_id(0)

    @pl.when(k == 0)
    def _():
        g_acc_ref[...] = jnp.zeros_like(g_acc_ref)

    # Sum-pool with a 0/1 one-hot (exact in bf16), f32 accumulation.
    g_acc_ref[...] += jnp.dot(pool_ref[...], h_ref[...],
                              preferred_element_type=jnp.float32)

    @pl.when(k == pl.num_programs(0) - 1)
    def _():
        g = g_acc_ref[...] * inv_cnt_ref[...]       # exact mean (f32 counts)
        z = jnp.dot(g.astype(jnp.bfloat16), w1_ref[...],
                    preferred_element_type=jnp.float32) + b1_ref[...]
        z = jnp.maximum(z, 0.0)
        out_ref[...] = (jnp.dot(z.astype(jnp.bfloat16), w2_ref[...],
                                preferred_element_type=jnp.float32)
                        + b2_ref[...])


# ------------------------------- parameters -----------------------------------
def init_params(key, f_in, hidden, mlp_hidden, out_dim):
    ks = jax.random.split(key, 4)
    scale = 0.1
    return {
        "w_self":  scale * jax.random.normal(ks[0], (f_in, hidden), jnp.float32),
        "w_neigh": scale * jax.random.normal(ks[1], (f_in, hidden), jnp.float32),
        "b_gnn":   jnp.zeros((1, hidden), jnp.float32),
        "w1":      scale * jax.random.normal(ks[2], (hidden, mlp_hidden), jnp.float32),
        "b1":      jnp.zeros((1, mlp_hidden), jnp.float32),
        "w2":      scale * jax.random.normal(ks[3], (mlp_hidden, out_dim), jnp.float32),
        "b2":      jnp.zeros((1, out_dim), jnp.float32),
    }


# ------------------------------- forward --------------------------------------
def net_forward(params, x, edge_index, batch, num_graphs):
    # Mirrors `if x is None: x = torch.ones((batch.shape[0], 1))`
    if x is None:
        x = jnp.ones((batch.shape[0], 1), jnp.float32)
    x = x.astype(jnp.float32)
    n, f_in = x.shape
    hidden = params["w_self"].shape[1]
    mlp_hidden = params["w1"].shape[1]
    out_dim = params["w2"].shape[1]

    # Padded / lane-dense sizes.
    tile_n = LANE if n <= 1024 else 4 * LANE          # node tile (rows/cols of A)
    n_pad = _round_up(n, tile_n)
    f_pad = _round_up(f_in, LANE)
    h_pad = _round_up(hidden, LANE)
    m_pad = _round_up(mlp_hidden, LANE)
    o_pad = _round_up(out_dim, LANE)
    g_pad = _round_up(num_graphs, 8)
    nt = n_pad // tile_n

    # ---- glue (plain JAX): dense adjacency, pooling one-hot, packed params ----
    # TODO(synk): for large sparse graphs, replace the dense [N,N] adjacency with
    # CSR offsets + PrefetchScalarGridSpec row gathers (O(E) instead of O(N^2)).
    src, dst = edge_index[0], edge_index[1]
    adj = jnp.zeros((n_pad, n_pad), jnp.float32).at[dst, src].add(1.0)
    adj = adj.astype(jnp.bfloat16)                                   # small ints: exact

    x_pad = jnp.zeros((n_pad, f_pad), jnp.float32).at[:n, :f_in].set(x)
    x_pad = x_pad.astype(jnp.bfloat16)

    batch_pad = jnp.full((n_pad,), -1, jnp.int32).at[:n].set(batch.astype(jnp.int32))
    onehot = batch_pad[None, :] == jnp.arange(g_pad, dtype=jnp.int32)[:, None]
    counts = jnp.maximum(onehot.sum(axis=1, keepdims=True).astype(jnp.float32), 1.0)
    pool = onehot.astype(jnp.bfloat16)                               # [G_pad, N_pad] 0/1
    inv_counts = jnp.broadcast_to(1.0 / counts, (g_pad, h_pad)).astype(jnp.float32)

    def pad2(a, r, c):
        return jnp.zeros((r, c), jnp.float32).at[:a.shape[0], :a.shape[1]].set(a)

    w_cat = jnp.concatenate(
        [pad2(params["w_self"], f_pad, h_pad),
         pad2(params["w_neigh"], f_pad, h_pad)], axis=0).astype(jnp.bfloat16)
    b_gnn = pad2(params["b_gnn"], 1, h_pad)
    w1 = pad2(params["w1"], h_pad, m_pad).astype(jnp.bfloat16)
    b1 = pad2(params["b1"], 1, m_pad)
    w2 = pad2(params["w2"], m_pad, o_pad).astype(jnp.bfloat16)
    b2 = pad2(params["b2"], 1, o_pad)

    # ------------------- kernel 1: GNN layer -> H [N_pad, H_pad] ---------------
    gnn_cost = pl.CostEstimate(
        flops=2 * n_pad * n_pad * f_pad + 2 * n_pad * (2 * f_pad) * h_pad,
        transcendentals=0,
        bytes_accessed=(adj.size * 2 + 2 * x_pad.size * 2 + w_cat.size * 2
                        + b_gnn.size * 4 + n_pad * h_pad * 2))

    h = pl.pallas_call(
        _gnn_kernel,
        out_shape=jax.ShapeDtypeStruct((n_pad, h_pad), jnp.bfloat16),
        grid_spec=pltpu.PrefetchScalarGridSpec(
            num_scalar_prefetch=0,
            grid=(nt, nt),
            in_specs=[
                pl.BlockSpec((tile_n, tile_n), lambda i, k: (i, k)),    # A tile
                pl.BlockSpec((tile_n, f_pad), lambda i, k: (k, 0)),     # X rows (src)
                pl.BlockSpec((tile_n, f_pad), lambda i, k: (i, 0)),     # X rows (self)
                pl.BlockSpec((2 * f_pad, h_pad), lambda i, k: (0, 0)),  # W_cat
                pl.BlockSpec((1, h_pad), lambda i, k: (0, 0)),          # bias
            ],
            out_specs=pl.BlockSpec((tile_n, h_pad), lambda i, k: (i, 0)),
            scratch_shapes=[pltpu.VMEM((tile_n, f_pad), jnp.float32)],
        ),
        compiler_params=pltpu.CompilerParams(
            dimension_semantics=("parallel", "arbitrary"),
            vmem_limit_bytes=_VMEM_LIMIT),
        cost_estimate=gnn_cost,
    )(adj, x_pad, x_pad, w_cat, b_gnn)

    # ------------------- kernel 2: mean pool + MLP head ------------------------
    mlp_cost = pl.CostEstimate(
        flops=(2 * g_pad * n_pad * h_pad + 2 * g_pad * h_pad * m_pad
               + 2 * g_pad * m_pad * o_pad),
        transcendentals=0,
        bytes_accessed=(pool.size * 2 + h.size * 2 + inv_counts.size * 4
                        + w1.size * 2 + w2.size * 2 + (b1.size + b2.size) * 4
                        + g_pad * o_pad * 4))

    out = pl.pallas_call(
        _pool_mlp_kernel,
        out_shape=jax.ShapeDtypeStruct((g_pad, o_pad), jnp.float32),
        grid_spec=pltpu.PrefetchScalarGridSpec(
            num_scalar_prefetch=0,
            grid=(nt,),
            in_specs=[
                pl.BlockSpec((g_pad, tile_n), lambda k: (0, k)),        # one-hot pool
                pl.BlockSpec((g_pad, h_pad), lambda k: (0, 0)),         # 1/|g| bcast
                pl.BlockSpec((tile_n, h_pad), lambda k: (k, 0)),        # H rows
                pl.BlockSpec((h_pad, m_pad), lambda k: (0, 0)),         # W1
                pl.BlockSpec((1, m_pad), lambda k: (0, 0)),             # b1
                pl.BlockSpec((m_pad, o_pad), lambda k: (0, 0)),         # W2
                pl.BlockSpec((1, o_pad), lambda k: (0, 0)),             # b2
            ],
            out_specs=pl.BlockSpec((g_pad, o_pad), lambda k: (0, 0)),
            scratch_shapes=[pltpu.VMEM((g_pad, h_pad), jnp.float32)],
        ),
        compiler_params=pltpu.CompilerParams(
            dimension_semantics=("arbitrary",),
            vmem_limit_bytes=_VMEM_LIMIT),
        cost_estimate=mlp_cost,
    )(pool, inv_counts, h, w1, b1, w2, b2)

    return out[:num_graphs, :out_dim]


# ------------------------------- pure-JAX reference ----------------------------
def net_reference(params, x, edge_index, batch, num_graphs):
    if x is None:
        x = jnp.ones((batch.shape[0], 1), jnp.float32)
    x = x.astype(jnp.float32)
    n = x.shape[0]
    src, dst = edge_index[0], edge_index[1]
    adj = jnp.zeros((n, n), jnp.float32).at[dst, src].add(1.0)
    agg = adj @ x
    h = jnp.maximum(x @ params["w_self"] + agg @ params["w_neigh"]
                    + params["b_gnn"], 0.0)
    onehot = (batch[None, :] == jnp.arange(num_graphs)[:, None]).astype(jnp.float32)
    counts = jnp.maximum(onehot.sum(axis=1, keepdims=True), 1.0)
    g = (onehot / counts) @ h
    z = jnp.maximum(g @ params["w1"] + params["b1"], 0.0)
    return z @ params["w2"] + params["b2"]


if __name__ == "__main__":
    key = jax.random.PRNGKey(0)
    k_x, k_p = jax.random.split(key)

    # Small deterministic graph: 16 nodes, 2 graphs of 8 nodes each,
    # bidirectional ring edges inside each graph.
    N, F_IN, HIDDEN, MLP_HIDDEN, OUT_DIM, NUM_GRAPHS = 16, 8, 32, 32, 4, 2

    x = jax.random.normal(k_x, (N, F_IN), jnp.float32)
    batch = jnp.concatenate([jnp.zeros(8, jnp.int32), jnp.ones(8, jnp.int32)])

    srcs, dsts = [], []
    for g in range(NUM_GRAPHS):
        base = g * 8
        for i in range(8):
            a, b = base + i, base + (i + 1) % 8
            srcs += [a, b]
            dsts += [b, a]
    edge_index = jnp.array([srcs, dsts], dtype=jnp.int32)  # [2, E]

    params = init_params(k_p, F_IN, HIDDEN, MLP_HIDDEN, OUT_DIM)

    out = net_forward(params, x, edge_index, batch, NUM_GRAPHS)
    out = jax.block_until_ready(out)
    assert out.shape == (NUM_GRAPHS, OUT_DIM)
    assert bool(jnp.all(jnp.isfinite(out)))

    ref = net_reference(params, x, edge_index, batch, NUM_GRAPHS)
    assert jnp.allclose(out, ref, rtol=1e-1, atol=1e-1), (out, ref)
    print("KERNEL_OK")
</pallas_src>

<mosaic_0001>
module attributes {stable_mosaic.version = 11 : i64} {
  func.func @_gnn_kernel(%arg0: i32, %arg1: i32, %arg2: memref<128x128xbf16, #tpu.memory_space<vmem>>, %arg3: memref<128x128xbf16, #tpu.memory_space<vmem>>, %arg4: memref<128x128xbf16, #tpu.memory_space<vmem>>, %arg5: memref<256x128xbf16, #tpu.memory_space<vmem>>, %arg6: memref<1x128xf32, #tpu.memory_space<vmem>>, %arg7: memref<128x128xbf16, #tpu.memory_space<vmem>>, %arg8: memref<128x128xf32, #tpu.memory_space<vmem>>) attributes {dimension_semantics = [#tpu.dimension_semantics<parallel>, #tpu.dimension_semantics<arbitrary>], iteration_bounds = array<i64: 1, 1>, scalar_prefetch = 0 : i64, scratch_operands = 1 : i64, tpu.core_type = #tpu.core_type<tc>, window_params = [{transform_indices = @transform_0, window_bounds = array<i64: 128, 128>}, {transform_indices = @transform_1, window_bounds = array<i64: 128, 128>}, {transform_indices = @transform_2, window_bounds = array<i64: 128, 128>}, {pipeline_mode = #tpu.pipeline_mode<synchronous>, transform_indices = @transform_3, window_bounds = array<i64: 256, 128>}, {pipeline_mode = #tpu.pipeline_mode<synchronous>, transform_indices = @transform_4, window_bounds = array<i64: 1, 128>}, {transform_indices = @transform_5, window_bounds = array<i64: 128, 128>}]} {
    %c0_i32 = arith.constant 0 : i32
    %0 = arith.cmpi eq, %arg1, %c0_i32 : i32
    %1 = arith.extui %0 : i1 to i32
    %c0_i32_0 = arith.constant 0 : i32
    %2 = arith.cmpi ne, %1, %c0_i32_0 : i32
    scf.if %2 {
      %cst_10 = arith.constant 0.000000e+00 : f32
      %12 = vector.broadcast %cst_10 : f32 to vector<128x128xf32>
      %c0_11 = arith.constant 0 : index
      %c0_12 = arith.constant 0 : index
      %13 = vector.load %arg8[%c0_11, %c0_12] : memref<128x128xf32, #tpu.memory_space<vmem>>, vector<128x128xf32>
      tpu.vector_store %arg8[%c0_11, %c0_12], %12 {strides = array<i32>} : memref<128x128xf32, #tpu.memory_space<vmem>>, vector<128x128xf32>,
    } else {
    }
    %c0 = arith.constant 0 : index
    %c0_1 = arith.constant 0 : index
    %3 = vector.load %arg8[%c0, %c0_1] : memref<128x128xf32, #tpu.memory_space<vmem>>, vector<128x128xf32>
    %c0_2 = arith.constant 0 : index
    %c0_3 = arith.constant 0 : index
    %4 = vector.load %arg2[%c0_2, %c0_3] : memref<128x128xbf16, #tpu.memory_space<vmem>>, vector<128x128xbf16>
    %c0_4 = arith.constant 0 : index
    %c0_5 = arith.constant 0 : index
    %5 = vector.load %arg3[%c0_4, %c0_5] : memref<128x128xbf16, #tpu.memory_space<vmem>>, vector<128x128xbf16>
    %cst = arith.constant dense<0.000000e+00> : vector<128x128xf32>
    %6 = tpu.matmul %4, %5, %cst {dimension_numbers = #tpu.dot_dimension_numbers<[1], [0], [0], [1], [0, 0, 1, 1], [], []>} : vector<128x128xbf16>, vector<128x128xbf16>, vector<128x128xf32> -> vector<128x128xf32>
    %7 = arith.addf %3, %6 : vector<128x128xf32>
    %c0_6 = arith.constant 0 : index
    %c0_7 = arith.constant 0 : index
    %8 = vector.load %arg8[%c0_6, %c0_7] : memref<128x128xf32, #tpu.memory_space<vmem>>, vector<128x128xf32>
    tpu.vector_store %arg8[%c0_6, %c0_7], %7 {strides = array<i32>} : memref<128x128xf32, #tpu.memory_space<vmem>>, vector<128x128xf32>,
    %c0_i32_8 = arith.constant 0 : i32
    %9 = arith.cmpi eq, %arg1, %c0_i32_8 : i32
    %10 = arith.extui %9 : i1 to i32
    %c0_i32_9 = arith.constant 0 : i32
    %11 = arith.cmpi ne, %10, %c0_i32_9 : i32
    scf.if %11 {
      %c0_10 = arith.constant 0 : index
      %c0_11 = arith.constant 0 : index
      %12 = vector.load %arg4[%c0_10, %c0_11] : memref<128x128xbf16, #tpu.memory_space<vmem>>, vector<128x128xbf16>
      %c0_12 = arith.constant 0 : index
      %c0_13 = arith.constant 0 : index
      %13 = vector.load %arg8[%c0_12, %c0_13] : memref<128x128xf32, #tpu.memory_space<vmem>>, vector<128x128xf32>
      %14 = arith.truncf %13 : vector<128x128xf32> to vector<128x128xbf16>
      %15 = tpu.concatenate %12, %14 in 1 : vector<128x128xbf16>, vector<128x128xbf16> -> vector<128x256xbf16>
      %c0_14 = arith.constant 0 : index
      %c0_15 = arith.constant 0 : index
      %16 = vector.load %arg5[%c0_14, %c0_15] : memref<256x128xbf16, #tpu.memory_space<vmem>>, vector<256x128xbf16>
      %cst_16 = arith.constant dense<0.000000e+00> : vector<128x128xf32>
      %17 = tpu.matmul %15, %16, %cst_16 {dimension_numbers = #tpu.dot_dimension_numbers<[1], [0], [0], [1], [0, 0, 1, 1], [], []>} : vector<128x256xbf16>, vector<256x128xbf16>, vector<128x128xf32> -> vector<128x128xf32>
      %c0_17 = arith.constant 0 : index
      %c0_18 = arith.constant 0 : index
      %18 = vector.load %arg6[%c0_17, %c0_18] : memref<1x128xf32, #tpu.memory_space<vmem>>, vector<1x128xf32>
      %19 = vector.broadcast %18 : vector<1x128xf32> to vector<128x128xf32>
      %20 = arith.addf %17, %19 : vector<128x128xf32>
      %cst_19 = arith.constant 0.000000e+00 : f32
      %21 = vector.broadcast %cst_19 : f32 to vector<128x128xf32>
      %22 = arith.maximumf %20, %21 : vector<128x128xf32>
      %23 = arith.truncf %22 : vector<128x128xf32> to vector<128x128xbf16>
      %c0_20 = arith.constant 0 : index
      %c0_21 = arith.constant 0 : index
      %24 = vector.load %arg7[%c0_20, %c0_21] : memref<128x128xbf16, #tpu.memory_space<vmem>>, vector<128x128xbf16>
      tpu.vector_store %arg7[%c0_20, %c0_21], %23 {strides = array<i32>} : memref<128x128xbf16, #tpu.memory_space<vmem>>, vector<128x128xbf16>,
    } else {
    }
    return
  }
  func.func @transform_0(%arg0: i32, %arg1: i32) -> (i32, i32) {
    %c0_i32 = arith.constant 0 : i32
    return %arg0, %arg1 : i32, i32
  }
  func.func @transform_1(%arg0: i32, %arg1: i32) -> (i32, i32) {
    %c0_i32 = arith.constant 0 : i32
    %c0_i32_0 = arith.constant 0 : i32
    return %arg1, %c0_i32 : i32, i32
  }
  func.func @transform_2(%arg0: i32, %arg1: i32) -> (i32, i32) {
    %c0_i32 = arith.constant 0 : i32
    %c0_i32_0 = arith.constant 0 : i32
    return %arg0, %c0_i32 : i32, i32
  }
  func.func @transform_3(%arg0: i32, %arg1: i32) -> (i32, i32) {
    %c0_i32 = arith.constant 0 : i32
    %c0_i32_0 = arith.constant 0 : i32
    %c0_i32_1 = arith.constant 0 : i32
    return %c0_i32, %c0_i32_0 : i32, i32
  }
  func.func @transform_4(%arg0: i32, %arg1: i32) -> (i32, i32) {
    %c0_i32 = arith.constant 0 : i32
    %c0_i32_0 = arith.constant 0 : i32
    %c0_i32_1 = arith.constant 0 : i32
    return %c0_i32, %c0_i32_0 : i32, i32
  }
  func.func @transform_5(%arg0: i32, %arg1: i32) -> (i32, i32) {
    %c0_i32 = arith.constant 0 : i32
    %c0_i32_0 = arith.constant 0 : i32
    return %arg0, %c0_i32 : i32, i32
  }
}

</mosaic_0001>

<bundles_post_ra>
// kernel: tpu_custom_call.1
= control target key start
LH: loop header
LB: loop body
LE: loop exit
PB: predicated region body
PF: predicated region fallthrough
CT: control target
= control target key end

     0   :  { %10 = vsyncpa [#allocation4], 0  ;;  %s1368_s0 = inlined_call_operand.hbm [shape: bf16[128,128], index: 0, kind: input, shape index: {}]   ;;  %s1369_s1 = inlined_call_operand.hbm [shape: bf16[128,128], index: 1, kind: input, shape index: {}]   ;;  %s1370_s2 = inlined_call_operand.hbm [shape: bf16[128,128], index: 2, kind: input, shape index: {}]   ;;  %s1371_s3 = inlined_call_operand.hbm [shape: bf16[256,128], index: 3, kind: input, shape index: {}]   ;;  %s1372_s4 = inlined_call_operand.vmem [shape: f32[1,128], index: 4, kind: input, shape index: {}]   ;;  %s1373_s5 = inlined_call_operand.hbm [shape: bf16[128,128], index: 5, kind: output, shape index: {}]  }
   0x1   :  { %11 = vsyncpa [#allocation7], 0 }
   0x2   :  { %12 = vsyncpa [#allocation10], 0 }
   0x3   :  { %13 = vsyncpa [#allocation5], 0  ;;  %s1221_s18 = smov [#allocation6]   ;;  %s1222_s20 = smov [#allocation3]  }
   0x4   :  { %s31_s19 = sshll.u32 %s1221_s18, 4  ;;  %s19_s21 = sshll.u32 %s1222_s20, 4  ;;  %s32_s19 = int_to_ptr.vmem [resolvable:$true] %s31_s19  ;;  %s1258_s21 = int_to_ptr.vmem [resolvable:$true] %s19_s21 }
   0x5   :  { %s1103_s24 = scalar_lea.hbm %s1369_s1, 1024 }
   0x6   :  { %p1104_p0 = scmp.ne.s32.totalorder %s1369_s1, %s1103_s24  ;;  %p1107_p1 = scmp.lt.u32.totalorder %s1103_s24, %s1369_s1 }
   0x8   :  { %p1109_p2 = pnand %p1107_p1, %p1104_p0 }
   0xa   :  { %1112 = shalt.err (!%p1109_p2)
}
   0xb   :  { %s1113_s29 = scalar_lea.vmem %s32_s19, 1024  ;;  %p1118_p4 = scmp.lt.s32.totalorder %s32_s19, %s32_s19 }
   0xc   :  { %p1114_p3 = scmp.ne.s32.totalorder %s32_s19, %s1113_s29  ;;  %p1119_p5 = scmp.lt.s32.totalorder %s1113_s29, %s1113_s29 }
   0xe   :  { %p1120_p6 = por %p1119_p5, %p1118_p4 }
  0x10   :  { %p1121_p7 = pnand %p1120_p6, %p1114_p3 }
  0x12   :  { %1124 = shalt.err (!%p1121_p7)
}
  0x13   :  { %s1223_s30 = smov 64   ;;  %s1224_s6 = smov 4  }
  0x14   :  { %37 = dma.hbm_to_vmem [thread:$0]  %s1369_s1, 1024, %s32_s19, [#allocation7], %s1223_s30, %s1223_s30, %s1224_s6  }
  0x15   :  { %s1125_s11 = scalar_lea.hbm %s1368_s0, 1024 }
  0x16   :  { %p1126_p8 = scmp.ne.s32.totalorder %s1368_s0, %s1125_s11  ;;  %p1129_p9 = scmp.lt.u32.totalorder %s1125_s11, %s1368_s0 }
  0x18   :  { %p1131_p10 = pnand %p1129_p9, %p1126_p8 }
  0x1a   :  { %1134 = shalt.err (!%p1131_p10)
}
  0x1b   :  { %s1135_s16 = scalar_lea.vmem %s1258_s21, 1024  ;;  %p1140_p12 = scmp.lt.s32.totalorder %s1258_s21, %s1258_s21 }
  0x1c   :  { %p1136_p11 = scmp.ne.s32.totalorder %s1258_s21, %s1135_s16  ;;  %p1141_p13 = scmp.lt.s32.totalorder %s1135_s16, %s1135_s16 }
  0x1e   :  { %p1142_p0 = por %p1141_p13, %p1140_p12 }
  0x20   :  { %p1143_p1 = pnand %p1142_p0, %p1136_p11 }
  0x22   :  { %1146 = shalt.err (!%p1143_p1)
}
  0x23   :  { %25 = dma.hbm_to_vmem [thread:$0]  %s1368_s0, 1024, %s1258_s21, [#allocation4], %s1223_s30, %s1223_s30, %s1224_s6  }
  0x24   :  { %s1225_s18 = smov [#allocation8]   ;;  %s1226_s20 = smov [#allocation9]  }
  0x25   :  { %s43_s19 = sshll.u32 %s1225_s18, 4  ;;  %s55_s22 = sshll.u32 %s1226_s20, 4  ;;  %s44_s19 = int_to_ptr.vmem [resolvable:$true] %s43_s19  ;;  %s1295_s22 = int_to_ptr.vmem [resolvable:$true] %s55_s22 }
  0x26   :  { %s1147_s25 = scalar_lea.hbm %s1370_s2, 1024 }
  0x27   :  { %p1148_p2 = scmp.ne.s32.totalorder %s1370_s2, %s1147_s25  ;;  %p1151_p3 = scmp.lt.u32.totalorder %s1147_s25, %s1370_s2 }
  0x29   :  { %p1153_p4 = pnand %p1151_p3, %p1148_p2 }
  0x2b   :  { %1156 = shalt.err (!%p1153_p4)
}
  0x2c   :  { %s1157_s0 = scalar_lea.vmem %s44_s19, 1024  ;;  %p1162_p6 = scmp.lt.s32.totalorder %s44_s19, %s44_s19 }
  0x2d   :  { %p1158_p5 = scmp.ne.s32.totalorder %s44_s19, %s1157_s0  ;;  %p1163_p7 = scmp.lt.s32.totalorder %s1157_s0, %s1157_s0 }
  0x2f   :  { %p1164_p8 = por %p1163_p7, %p1162_p6 }
  0x31   :  { %p1165_p9 = pnand %p1164_p8, %p1158_p5 }
  0x33   :  { %1168 = shalt.err (!%p1165_p9)
}
  0x34   :  { %49 = dma.hbm_to_vmem [thread:$0]  %s1370_s2, 1024, %s44_s19, [#allocation7], %s1223_s30, %s1223_s30, %s1224_s6  }
  0x35   :  { %s1169_s10 = scalar_lea.hbm %s1371_s3, 2048 }
  0x36   :  { %p1170_p10 = scmp.ne.s32.totalorder %s1371_s3, %s1169_s10  ;;  %p1173_p11 = scmp.lt.u32.totalorder %s1169_s10, %s1371_s3 }
  0x38   :  { %p1175_p12 = pnand %p1173_p11, %p1170_p10 }
  0x3a   :  { %1178 = shalt.err (!%p1175_p12)
}
  0x3b   :  { %s1179_s15 = scalar_lea.vmem %s1295_s22, 2048  ;;  %p1184_p0 = scmp.lt.s32.totalorder %s1295_s22, %s1295_s22 }
  0x3c   :  { %p1180_p13 = scmp.ne.s32.totalorder %s1295_s22, %s1179_s15  ;;  %p1185_p1 = scmp.lt.s32.totalorder %s1179_s15, %s1179_s15 }
  0x3e   :  { %p1186_p2 = por %p1185_p1, %p1184_p0 }
  0x40   :  { %p1187_p3 = pnand %p1186_p2, %p1180_p13 }
  0x42   :  { %1190 = shalt.err (!%p1187_p3)
}
  0x43   :  { %61 = dma.hbm_to_vmem [thread:$0]  %s1371_s3, 2048, %s1295_s22, [#allocation10], %s1223_s30, %s1223_s30, %s1224_s6  }
  0x44   :  { %1213 = dma.done.wait [#allocation4], 1024  }
  0x45   :  { %1214 = vsyncadd [#allocation4], 4294966272 }
  0x46   :  { %1215 = dma.done.wait [#allocation7], 2048  }
  0x47   :  { %1216 = vsyncadd [#allocation7], 4294965248 }
  0x48   :  { %1217 = dma.done.wait [#allocation10], 2048  }
  0x49   :  { %1218 = vsyncadd [#allocation10], 4294965248  ;;  %v1063_v0 = vld [vmem:[#allocation6] sm:$0xff]   ;;  %v1064_v1 = vld [vmem:[#allocation6 + $0x8] sm:$0xff]  }
  0x4a   :  { %1008 = vmatprep.subr.bf16.mxu0 %v1063_v0  ;;  %v1065_v2 = vld [vmem:[#allocation6 + $0x10] sm:$0xff]   ;;  %v1066_v3 = vld [vmem:[#allocation6 + $0x18] sm:$0xff]   ;;  %v1071_v4 = vld [vmem:[#allocation3] sm:$0xff]  }
  0x4b   :  { %1009 = vmatpush3.bf16.msra.mxu0 %v1063_v0  ;;  %1024 = vmatprep.mubr.bf16.mxu0 %v1071_v4  ;;  %v1067_v5 = vld [vmem:[#allocation6 + $0x20] sm:$0xff]   ;;  %v1068_v6 = vld [vmem:[#allocation6 + $0x28] sm:$0xff]   ;;  %v1069_v10 = vld [vmem:[#allocation6 + $0x30] sm:$0xff]  }
  0x4c   :  { %1010 = vmatprep.subr.bf16.mxu0 %v1064_v1  ;;  %v1079_v7 = vld [vmem:[#allocation9 + $0x40] sm:$0xff]   ;;  %v1081_v9 = vld [vmem:[#allocation9 + $0x48] sm:$0xff]   ;;  %v1083_v12 = vld [vmem:[#allocation9 + $0x50] sm:$0xff]  }
  0x4d   :  { %v1080_v8 = vld [vmem:[#allocation9] sm:$0xff]   ;;  %1040 = vmatprep.subr.bf16.mxu1 %v1079_v7  ;;  %v1082_v11 = vld [vmem:[#allocation9 + $0x8] sm:$0xff]   ;;  %v1070_v13 = vld [vmem:[#allocation6 + $0x38] sm:$0xff]  }
  0x4e   :  { %1048 = vmatpush3.bf16.msra.mxu1 %v1080_v8  ;;  %v1084_v14 = vld [vmem:[#allocation9 + $0x10] sm:$0xff]   ;;  %v1085_v15 = vld [vmem:[#allocation9 + $0x58] sm:$0xff]   ;;  %v1072_v17 = vld [vmem:[#allocation3 + $0x8] sm:$0xff]  }
  0x4f   :  { %1011 = vmatpush3.bf16.msra.mxu0 %v1064_v1  ;;  %1041 = vmatprep.subr.bf16.mxu1 %v1081_v9  ;;  %v1086_v16 = vld [vmem:[#allocation9 + $0x18] sm:$0xff]   ;;  %v1087_v18 = vld [vmem:[#allocation9 + $0x60] sm:$0xff]   ;;  %v1073_v19 = vld [vmem:[#allocation3 + $0x10] sm:$0xff]  }
  0x50   :  { %1012 = vmatprep.subr.bf16.mxu0 %v1065_v2  ;;  %v1088_v20 = vld [vmem:[#allocation9 + $0x20] sm:$0xff]   ;;  %v1089_v21 = vld [vmem:[#allocation9 + $0x68] sm:$0xff]   ;;  %v1074_v22 = vld [vmem:[#allocation3 + $0x18] sm:$0xff]  }
  0x51   :  { %v1090_v23 = vld [vmem:[#allocation9 + $0x28] sm:$0xff]   ;;  %v1075_v24 = vld [vmem:[#allocation3 + $0x20] sm:$0xff]   ;;  %v1091_v25 = vld [vmem:[#allocation9 + $0x70] sm:$0xff]  }
  0x52   :  { %1049 = vmatpush3.bf16.msra.mxu1 %v1082_v11  ;;  %v1076_v26 = vld [vmem:[#allocation3 + $0x28] sm:$0xff]   ;;  %v1077_v27 = vld [vmem:[#allocation3 + $0x30] sm:$0xff]   ;;  %v1078_v28 = vld [vmem:[#allocation3 + $0x38] sm:$0xff]  }
  0x53   :  { %1013 = vmatpush3.bf16.msra.mxu0 %v1065_v2  ;;  %1042 = vmatprep.subr.bf16.mxu1 %v1083_v12  ;;  %v1092_v29 = vld [vmem:[#allocation9 + $0x30] sm:$0xff]   ;;  %v1093_v30 = vld [vmem:[#allocation9 + $0x78] sm:$0xff]   ;;  %v1095_v37 = vld [vmem:[#allocation8] sm:$0xff]  }
  0x54   :  { %1014 = vmatprep.subr.bf16.mxu0 %v1066_v3  ;;  %v1094_v31 = vld [vmem:[#allocation9 + $0x38] sm:$0xff]   ;;  %v1096_v44 = vld [vmem:[#allocation8 + $0x10] sm:$0xff]   ;;  %v1101_v45 = vld [vmem:[#allocation8 + $0x8] sm:$0xff]  }
  0x55   :  { %v1097_v51 = vld [vmem:[#allocation8 + $0x18] sm:$0xff]   ;;  %v1098_v57 = vld [vmem:[#allocation8 + $0x20] sm:$0xff]   ;;  %v1099_v61 = vld [vmem:[#allocation8 + $0x28] sm:$0xff]  }
  0x56   :  { %1050 = vmatpush3.bf16.msra.mxu1 %v1084_v14  ;;  %v1100_v62 = vld [vmem:[#allocation8 + $0x30] sm:$0xff]   ;;  %v1102_v63 = vld [vmem:[#allocation8 + $0x38] sm:$0xff]   ;;  %v1335_v4 = vld [vmem:[%s1372_s4] ss:$0 sm:$0xff]  ;;  %s1227_s4 = smov [#allocation11]  }
  0x57   :  { %1015 = vmatpush3.bf16.msra.mxu0 %v1066_v3  ;;  %1043 = vmatprep.subr.bf16.mxu1 %v1085_v15  ;;  %s794_s17 = sshll.u32 %s1227_s4, 4  ;;  %s795_s17 = int_to_ptr.vmem [resolvable:$true] %s794_s17 }
  0x58   :  { %1016 = vmatprep.subr.bf16.mxu0 %v1067_v5  ;;  %s1191_s18 = scalar_lea.vmem %s795_s17, 1024  ;;  %p1196_p5 = scmp.lt.s32.totalorder %s795_s17, %s795_s17 }
  0x59   :  { %p1192_p4 = scmp.ne.s32.totalorder %s795_s17, %s1191_s18  ;;  %p1197_p6 = scmp.lt.s32.totalorder %s1191_s18, %s1191_s18 }
  0x5a   :  { %1051 = vmatpush3.bf16.msra.mxu1 %v1086_v16 }
  0x5b   :  { %1017 = vmatpush3.bf16.msra.mxu0 %v1067_v5  ;;  %1044 = vmatprep.subr.bf16.mxu1 %v1087_v18  ;;  %p1198_p7 = por %p1197_p6, %p1196_p5 }
  0x5c   :  { %1018 = vmatprep.subr.bf16.mxu0 %v1068_v6 }
  0x5d   :  { %p1199_p8 = pnand %p1198_p7, %p1192_p4 }
  0x5e   :  { %1052 = vmatpush3.bf16.msra.mxu1 %v1088_v20 }
  0x5f   :  { %1019 = vmatpush3.bf16.msra.mxu0 %v1068_v6  ;;  %1045 = vmatprep.subr.bf16.mxu1 %v1089_v21 }
  0x60   :  { %1020 = vmatprep.subr.bf16.mxu0 %v1069_v10 }
  0x62   :  { %1053 = vmatpush3.bf16.msra.mxu1 %v1090_v23 }
  0x63   :  { %1021 = vmatpush3.bf16.msra.mxu0 %v1069_v10  ;;  %1046 = vmatprep.subr.bf16.mxu1 %v1091_v25 }
  0x64   :  { %1022 = vmatprep.subr.bf16.mxu0 %v1070_v13 }
  0x66   :  { %1054 = vmatpush3.bf16.msra.mxu1 %v1092_v29 }
  0x67   :  { %1023 = vmatpush3.bf16.msra.mxu0 %v1070_v13  ;;  %1047 = vmatprep.subr.bf16.mxu1 %v1093_v30 }
  0x68   :  { %944 = vmatprep.subr.bf16.mxu0 %v1079_v7 }
  0x6a   :  { %1025 = vmatmul.mubr.bf16.vlgmr.msra.gmra.mrb[0].mxu0 %v1072_v17  ;;  %1055 = vmatpush3.bf16.msra.mxu1 %v1094_v31 }
  0x6b   :  { %1028 = vmatprep.mubr.bf16.mxu0 %v1073_v19  ;;  %945 = vmatpush3.bf16.msra.mxu0 %v1080_v8 }
  0x6c   :  { %946 = vmatprep.subr.bf16.mxu0 %v1081_v9 }
  0x6f   :  { %947 = vmatpush3.bf16.msra.mxu0 %v1082_v11 }
  0x70   :  { %948 = vmatprep.subr.bf16.mxu0 %v1083_v12 }
  0x72   :  { %1029 = vmatmul.mubr.bf16.gmra.mrb[4].mxu0 %v1074_v22 }
  0x73   :  { %1032 = vmatprep.mubr.bf16.mxu0 %v1075_v24  ;;  %949 = vmatpush3.bf16.msra.mxu0 %v1084_v14 }
  0x74   :  { %950 = vmatprep.subr.bf16.mxu0 %v1085_v15 }
  0x77   :  { %951 = vmatpush3.bf16.msra.mxu0 %v1086_v16 }
  0x78   :  { %952 = vmatprep.subr.bf16.mxu0 %v1087_v18 }
  0x7a   :  { %1033 = vmatmul.mubr.bf16.gmra.mrb[8].mxu0 %v1076_v26 }
  0x7b   :  { %1036 = vmatprep.mubr.bf16.mxu0 %v1077_v27  ;;  %953 = vmatpush3.bf16.msra.mxu0 %v1088_v20 }
  0x7c   :  { %954 = vmatprep.subr.bf16.mxu0 %v1089_v21 }
  0x7f   :  { %955 = vmatpush3.bf16.msra.mxu0 %v1090_v23 }
  0x80   :  { %956 = vmatprep.subr.bf16.mxu0 %v1091_v25 }
  0x82   :  { %1037 = vmatmul.mubr.bf16.gmra.mrb[12].mxu0 %v1078_v28 }
  0x83   :  { %957 = vmatpush3.bf16.msra.mxu0 %v1092_v29 }
  0x84   :  { %958 = vmatprep.subr.bf16.mxu0 %v1093_v30 }
  0x87   :  { %959 = vmatpush3.bf16.msra.mxu0 %v1094_v31 }
 0x13d   :  { %v1026_v32 = vpop.f32.mrb[0].mxu0 }
 0x13e   :  { %v275_v33 = vpop.f32.mrb[1].mxu0 }
 0x13f   :  { %v1027_v34 = vpop.f32.mrb[2].mxu0 }
 0x140   :  { %v406_v35 = vpack.c.bf16 %v1027_v34, %v1026_v32  ;;  %v278_v36 = vpop.f32.mrb[3].mxu0 }
 0x141   :  { %v405_v38 = vpack.c.bf16 %v278_v36, %v275_v33 }
 0x143   :  { %628 = vmatprep.mubr.bf16.mxu0 %v405_v38 }
 0x144   :  { %629 = vmatmul.mubr.bf16.vlgmr.msra.gmra.mrb[16].mxu0 %v1095_v37 }
 0x145   :  { %v1030_v39 = vpop.f32.mrb[4].mxu0  ;;  %636 = vmatprep.mubr.bf16.mxu0 %v406_v35 }
 0x146   :  { %v291_v40 = vpop.f32.mrb[5].mxu0 }
 0x147   :  { %v1031_v41 = vpop.f32.mrb[6].mxu0 }
 0x148   :  { %v408_v42 = vpack.c.bf16 %v1031_v41, %v1030_v39  ;;  %v294_v43 = vpop.f32.mrb[7].mxu0 }
 0x149   :  { %v407_v46 = vpack.c.bf16 %v294_v43, %v291_v40 }
 0x14b   :  { %644 = vmatprep.mubr.bf16.mxu1 %v407_v46 }
 0x14c   :  { %645 = vmatmul.mubr.bf16.vlgmr.msra.gmra.mrb[0].mxu1 %v1096_v44  ;;  %637 = vmatmul.mubr.bf16.gmra.mrb[20].mxu0 %v1101_v45 }
 0x14d   :  { %652 = vmatprep.mubr.bf16.mxu1 %v408_v42  ;;  %v1034_v47 = vpop.f32.mrb[8].mxu0 }
 0x14e   :  { %v307_v48 = vpop.f32.mrb[9].mxu0 }
 0x14f   :  { %v1035_v49 = vpop.f32.mrb[10].mxu0 }
 0x150   :  { %v410_v50 = vpack.c.bf16 %v1035_v49, %v1034_v47  ;;  %v310_v52 = vpop.f32.mrb[11].mxu0 }
 0x151   :  { %v409_v53 = vpack.c.bf16 %v310_v52, %v307_v48 }
 0x154   :  { %653 = vmatmul.mubr.bf16.gmra.mrb[4].mxu1 %v1097_v51 }
 0x155   :  { %660 = vmatprep.mubr.bf16.mxu1 %v409_v53  ;;  %v1038_v54 = vpop.f32.mrb[12].mxu0 }
 0x156   :  { %v323_v55 = vpop.f32.mrb[13].mxu0 }
 0x157   :  { %v1039_v56 = vpop.f32.mrb[14].mxu0 }
 0x158   :  { %v412_v58 = vpack.c.bf16 %v1039_v56, %v1038_v54  ;;  %v326_v59 = vpop.f32.mrb[15].mxu0 }
 0x159   :  { %v411_v60 = vpack.c.bf16 %v326_v59, %v323_v55 }
 0x15c   :  { %661 = vmatmul.mubr.bf16.gmra.mrb[8].mxu1 %v1098_v57 }
 0x15d   :  { %668 = vmatprep.mubr.bf16.mxu1 %v410_v50 }
 0x164   :  { %669 = vmatmul.mubr.bf16.gmra.mrb[12].mxu1 %v1099_v61 }
 0x165   :  { %676 = vmatprep.mubr.bf16.mxu1 %v411_v60 }
 0x16c   :  { %677 = vmatmul.mubr.bf16.gmra.mrb[16].mxu1 %v1100_v62 }
 0x16d   :  { %684 = vmatprep.mubr.bf16.mxu1 %v412_v58 }
 0x174   :  { %685 = vmatmul.mubr.bf16.gmra.mrb[20].mxu1 %v1102_v63 }
 0x217   :  { %v960_v0 = vpop.f32.mrb[16].mxu0 }
 0x218   :  { %v961_v1 = vpop.f32.mrb[17].mxu0 }
 0x219   :  { %v962_v2 = vadd.f32 %v961_v1, %v960_v0  ;;  %v963_v3 = vpop.f32.mrb[18].mxu0 }
 0x21a   :  { %v964_v5 = vpop.f32.mrb[19].mxu0 }
 0x21b   :  { %v631_v6 = vadd.f32 %v962_v2, %v1335_v4  ;;  %v965_v7 = vadd.f32 %v964_v5, %v963_v3 }
 0x21d   :  { %v693_v8 = vmax.f32 %v631_v6, 0.0  ;;  %v634_v9 = vadd.f32 %v965_v7, %v1335_v4 }
 0x21f   :  { %v972_v10 = vpop.f32.mrb[0].mxu1  ;;  %v694_v11 = vmax.f32 %v634_v9, 0.0  ;;  %v966_v12 = vpop.f32.mrb[20].mxu0 }
 0x220   :  { %v973_v13 = vpop.f32.mrb[1].mxu1  ;;  %v967_v14 = vpop.f32.mrb[21].mxu0 }
 0x221   :  { %v974_v15 = vadd.f32 %v973_v13, %v972_v10  ;;  %v975_v16 = vpop.f32.mrb[2].mxu1  ;;  %v884_v17 = vpack.c.bf16 %v694_v11, %v693_v8  ;;  %v968_v18 = vadd.f32 %v967_v14, %v966_v12  ;;  %v969_v19 = vpop.f32.mrb[22].mxu0 }
 0x222   :  { %v976_v20 = vpop.f32.mrb[3].mxu1  ;;  %v970_v21 = vpop.f32.mrb[23].mxu0 }
 0x223   :  { %v647_v22 = vadd.f32 %v974_v15, %v1335_v4  ;;  %v977_v23 = vadd.f32 %v976_v20, %v975_v16  ;;  %885 = vst [vmem:[#allocation11] sm:$0xff] %v884_v17   ;;  %v639_v24 = vadd.f32 %v968_v18, %v1335_v4  ;;  %v971_v25 = vadd.f32 %v970_v21, %v969_v19 }
 0x225   :  { %v650_v26 = vadd.f32 %v977_v23, %v1335_v4  ;;  %v695_v27 = vmax.f32 %v639_v24, 0.0  ;;  %v642_v28 = vadd.f32 %v971_v25, %v1335_v4  ;;  %v697_v29 = vmax.f32 %v647_v22, 0.0 }
 0x227   :  { %v698_v30 = vmax.f32 %v650_v26, 0.0  ;;  %v978_v31 = vpop.f32.mrb[4].mxu1  ;;  %v696_v32 = vmax.f32 %v642_v28, 0.0 }
 0x228   :  { %v979_v33 = vpop.f32.mrb[5].mxu1 }
 0x229   :  { %v894_v34 = vpack.c.bf16 %v698_v30, %v697_v29  ;;  %v980_v35 = vadd.f32 %v979_v33, %v978_v31  ;;  %v981_v36 = vpop.f32.mrb[6].mxu1  ;;  %v889_v37 = vpack.c.bf16 %v696_v32, %v695_v27 }
 0x22a   :  { %v982_v38 = vpop.f32.mrb[7].mxu1 }
 0x22b   :  { %922 = vst [vmem:[#allocation11 + $0x10] sm:$0xff] %v894_v34   ;;  %v655_v39 = vadd.f32 %v980_v35, %v1335_v4  ;;  %v983_v40 = vadd.f32 %v982_v38, %v981_v36  ;;  %921 = vst [vmem:[#allocation11 + $0x8] sm:$0xff] %v889_v37  }
 0x22d   :  { %v658_v41 = vadd.f32 %v983_v40, %v1335_v4  ;;  %v699_v42 = vmax.f32 %v655_v39, 0.0 }
 0x22f   :  { %v700_v43 = vmax.f32 %v658_v41, 0.0  ;;  %v984_v44 = vpop.f32.mrb[8].mxu1 }
 0x230   :  { %v985_v45 = vpop.f32.mrb[9].mxu1 }
 0x231   :  { %v899_v46 = vpack.c.bf16 %v700_v43, %v699_v42  ;;  %v986_v47 = vadd.f32 %v985_v45, %v984_v44  ;;  %v987_v48 = vpop.f32.mrb[10].mxu1 }
 0x232   :  { %v988_v49 = vpop.f32.mrb[11].mxu1 }
 0x233   :  { %923 = vst [vmem:[#allocation11 + $0x18] sm:$0xff] %v899_v46   ;;  %v663_v50 = vadd.f32 %v986_v47, %v1335_v4  ;;  %v989_v51 = vadd.f32 %v988_v49, %v987_v48 }
 0x235   :  { %v666_v52 = vadd.f32 %v989_v51, %v1335_v4  ;;  %v701_v53 = vmax.f32 %v663_v50, 0.0 }
 0x237   :  { %v702_v54 = vmax.f32 %v666_v52, 0.0  ;;  %v990_v55 = vpop.f32.mrb[12].mxu1 }
 0x238   :  { %v991_v56 = vpop.f32.mrb[13].mxu1 }
 0x239   :  { %v904_v57 = vpack.c.bf16 %v702_v54, %v701_v53  ;;  %v992_v58 = vadd.f32 %v991_v56, %v990_v55  ;;  %v993_v59 = vpop.f32.mrb[14].mxu1 }
 0x23a   :  { %v994_v60 = vpop.f32.mrb[15].mxu1 }
 0x23b   :  { %924 = vst [vmem:[#allocation11 + $0x20] sm:$0xff] %v904_v57   ;;  %v671_v61 = vadd.f32 %v992_v58, %v1335_v4  ;;  %v995_v62 = vadd.f32 %v994_v60, %v993_v59 }
 0x23d   :  { %v674_v63 = vadd.f32 %v995_v62, %v1335_v4  ;;  %v703_v0 = vmax.f32 %v671_v61, 0.0 }
 0x23f   :  { %v704_v1 = vmax.f32 %v674_v63, 0.0  ;;  %v996_v2 = vpop.f32.mrb[16].mxu1 }
 0x240   :  { %v997_v3 = vpop.f32.mrb[17].mxu1 }
 0x241   :  { %v909_v5 = vpack.c.bf16 %v704_v1, %v703_v0  ;;  %v998_v6 = vadd.f32 %v997_v3, %v996_v2  ;;  %v999_v7 = vpop.f32.mrb[18].mxu1 }
 0x242   :  { %v1000_v8 = vpop.f32.mrb[19].mxu1 }
 0x243   :  { %925 = vst [vmem:[#allocation11 + $0x28] sm:$0xff] %v909_v5   ;;  %v679_v9 = vadd.f32 %v998_v6, %v1335_v4  ;;  %v1001_v10 = vadd.f32 %v1000_v8, %v999_v7 }
 0x245   :  { %v682_v11 = vadd.f32 %v1001_v10, %v1335_v4  ;;  %v705_v12 = vmax.f32 %v679_v9, 0.0 }
 0x247   :  { %v706_v13 = vmax.f32 %v682_v11, 0.0  ;;  %v1002_v14 = vpop.f32.mrb[20].mxu1 }
 0x248   :  { %v1003_v15 = vpop.f32.mrb[21].mxu1 }
 0x249   :  { %v914_v16 = vpack.c.bf16 %v706_v13, %v705_v12  ;;  %v1004_v17 = vadd.f32 %v1003_v15, %v1002_v14  ;;  %v1005_v18 = vpop.f32.mrb[22].mxu1 }
 0x24a   :  { %v1006_v19 = vpop.f32.mrb[23].mxu1 }
 0x24b   :  { %926 = vst [vmem:[#allocation11 + $0x30] sm:$0xff] %v914_v16   ;;  %v687_v20 = vadd.f32 %v1004_v17, %v1335_v4  ;;  %v1007_v21 = vadd.f32 %v1006_v19, %v1005_v18 }
 0x24d   :  { %v690_v22 = vadd.f32 %v1007_v21, %v1335_v4  ;;  %v707_v23 = vmax.f32 %v687_v20, 0.0 }
 0x24f   :  { %v708_v24 = vmax.f32 %v690_v22, 0.0 }
 0x251   :  { %v919_v25 = vpack.c.bf16 %v708_v24, %v707_v23 }
 0x253   :  { %927 = vst [vmem:[#allocation11 + $0x38] sm:$0xff] %v919_v25  }
 0x254   :  { %1202 = shalt.err (!%p1199_p8)
}
 0x255   :  { %s1203_s22 = scalar_lea.hbm %s1373_s5, 1024 }
 0x256   :  { %p1204_p9 = scmp.ne.s32.totalorder %s1373_s5, %s1203_s22  ;;  %p1207_p10 = scmp.lt.u32.totalorder %s1203_s22, %s1373_s5 }
 0x258   :  { %p1209_p11 = pnand %p1207_p10, %p1204_p9 }
 0x25a   :  { %1212 = shalt.err (!%p1209_p11)
}
 0x25b   :  { %800 = dma.vmem_to_hbm [thread:$0]  %s795_s17, 1024, %s1373_s5, [#allocation5], %s1223_s30, %s1223_s30, %s1224_s6  }
 0x25c   :  { %1219 = dma.done.wait [#allocation5], 1024  }
 0x25d   :  { %1220 = vsyncadd [#allocation5], 4294966272 }
 0x25e   :  { %804 = vsyncpa [#allocation4], 1 }
 0x25f   :  { %805 = vsyncpa [#allocation7], 1 }
 0x260   :  { %806 = vsyncpa [#allocation10], 1 }
 0x261   :  { %807 = vsyncpa [#allocation5], 1 }

</bundles_post_ra>
